<compile_context>
chip_gen: v6e
topology: v6e:2x2x1
jax: 0.10.0
libtpu: 0.0.40
codegen_flags: <defaults>
</compile_context>

<pallas_src>
import jax
import jax.numpy as jnp
from jax.experimental import pallas as pl
from jax.experimental.pallas import tpu as pltpu


def _round_up(x, m):
    return (x + m - 1) // m * m


def _vmem_budget_bytes():
    """Scoped-VMEM clamp with generation awareness: 75% of physical VMEM."""
    try:
        cap = int(pltpu.get_tpu_info().vmem_capacity_bytes)
    except Exception:
        cap = 64 * 2 ** 20          # conservative: v7x per-core physical size
    return (cap * 3) // 4


def node_clas_kernel(h_ref, w1_ref, b1_ref, w2_ref, b2_ref, w3_ref, b3_ref,
                     o_ref):
    """Fused fc1 -> ReLU -> fc2 -> ReLU -> out for one tile of nodes."""
    # fc1 + ReLU (MXU accumulates in f32 regardless of operand dtype).
    h1 = jnp.dot(h_ref[...], w1_ref[...], preferred_element_type=jnp.float32)
    h1 = jnp.maximum(h1 + b1_ref[...], 0.0)

    # fc2 + ReLU (cast the f32 activation back to the weight dtype so a
    # bf16 parameter path keeps using the bf16 MXU; no-op for f32 params).
    h2 = jnp.dot(h1.astype(w2_ref.dtype), w2_ref[...],
                 preferred_element_type=jnp.float32)
    h2 = jnp.maximum(h2 + b2_ref[...], 0.0)

    # out projection (logits) — written unpadded (class_dim lanes).
    y = jnp.dot(h2.astype(w3_ref.dtype), w3_ref[...],
                preferred_element_type=jnp.float32)
    o_ref[...] = (y + b3_ref[...]).astype(o_ref.dtype)


def node_clas_layer(h, params, *, tile_n=4096, compute_dtype=None,
                    out_dtype=None):
    """h: (N, in_dim). Returns (N, class_dim) logits.

    compute_dtype: if set (e.g. jnp.bfloat16), h and the weights are cast in
    the wrapper (halving the dominant HBM read stream) while accumulation
    stays f32.  out_dtype defaults to the original dtype of h.
    """
    w1, b1, w2, b2, w3, b3 = params
    N, in_dim = h.shape
    hid1, hid2, class_dim = w1.shape[1], w2.shape[1], w3.shape[1]
    out_dtype = out_dtype or h.dtype

    # --- parameter hygiene: (1, F) f32 biases (accumulation is f32 anyway),
    # optional bf16 cast of activations / weights for the MXU + HBM read.
    b1, b2, b3 = (jnp.asarray(b, jnp.float32).reshape(1, -1)
                  for b in (b1, b2, b3))
    if compute_dtype is not None:
        h = h.astype(compute_dtype)
        w1, w2, w3 = (w.astype(compute_dtype) for w in (w1, w2, w3))

    act_bytes = jnp.dtype(h.dtype).itemsize
    w_bytes = jnp.dtype(w1.dtype).itemsize
    out_bytes = jnp.dtype(out_dtype).itemsize
    weight_bytes = ((in_dim * hid1 + hid1 * hid2 + hid2 * class_dim) * w_bytes
                    + (hid1 + hid2 + class_dim) * 4)

    # --- row tile: as large as the VMEM budget allows (mem-bound kernel;
    # bigger tiles amortize the ~0.35 us per-step pipeline overhead), capped
    # by tile_n and by N itself, kept 8-sublane aligned.
    budget = _vmem_budget_bytes()

    def vmem_need(t):
        # double-buffered h/out tiles + weights/biases, with 2x headroom for
        # compiler temporaries.
        return 2 * (2 * t * in_dim * act_bytes
                    + 2 * t * class_dim * out_bytes
                    + weight_bytes)

    tile = max(8, min(_round_up(tile_n, 8), _round_up(N, 8)))
    while tile > 8 and vmem_need(tile) > budget:
        tile = max(8, _round_up(tile // 2, 8))

    n_pad = _round_up(N, tile)
    h_in = jnp.pad(h, ((0, n_pad - N), (0, 0))) if n_pad != N else h
    grid = (n_pad // tile,)

    vmem_limit = int(min(max(vmem_need(tile), 16 * 2 ** 20), budget))

    # --- advisory cost estimate so XLA schedules/overlaps the call sensibly.
    flops = 2 * n_pad * (in_dim * hid1 + hid1 * hid2 + hid2 * class_dim)
    bytes_accessed = (n_pad * in_dim * act_bytes
                      + n_pad * class_dim * out_bytes + weight_bytes)
    cost = pl.CostEstimate(flops=flops, transcendentals=0,
                           bytes_accessed=bytes_accessed)

    # Weights/biases are grid-invariant (index_map always (0, 0)); Pallas only
    # DMAs them once per kernel invocation.
    full = lambda r, c: pl.BlockSpec((r, c), lambda i: (0, 0))

    out = pl.pallas_call(
        node_clas_kernel,
        out_shape=jax.ShapeDtypeStruct((n_pad, class_dim), out_dtype),
        grid_spec=pltpu.PrefetchScalarGridSpec(
            num_scalar_prefetch=0,
            grid=grid,
            in_specs=[
                pl.BlockSpec((tile, in_dim), lambda i: (i, 0)),  # h tile
                full(in_dim, hid1),        # w1
                full(1, hid1),             # b1 (f32)
                full(hid1, hid2),          # w2
                full(1, hid2),             # b2 (f32)
                full(hid2, class_dim),     # w3
                full(1, class_dim),        # b3 (f32)
            ],
            out_specs=pl.BlockSpec((tile, class_dim), lambda i: (i, 0)),
        ),
        compiler_params=pltpu.CompilerParams(
            dimension_semantics=("parallel",),
            vmem_limit_bytes=vmem_limit),
        cost_estimate=cost,
    )(h_in, w1, b1, w2, b2, w3, b3)

    return out[:N] if n_pad != N else out


def init_params(key, in_dim, class_dim, dtype=jnp.float32):
    """Deterministic init mirroring NodeClasLayer.__init__.

    Weights: Xavier normal (gain=1). Biases: PyTorch Linear default,
    U(-1/sqrt(fan_in), 1/sqrt(fan_in)). Weights are stored as
    (in_features, out_features) — the transpose of nn.Linear.weight.
    """
    hid1 = in_dim // 2
    hid2 = hid1 // 2
    dims = [(in_dim, hid1), (hid1, hid2), (hid2, class_dim)]
    params = []
    for fan_in, fan_out in dims:
        key, kw, kb = jax.random.split(key, 3)
        std = (2.0 / (fan_in + fan_out)) ** 0.5           # xavier_normal_
        w = std * jax.random.normal(kw, (fan_in, fan_out), dtype)
        bound = 1.0 / (fan_in ** 0.5)
        b = jax.random.uniform(kb, (1, fan_out), dtype, -bound, bound)
        params += [w, b]
    return tuple(params)


def node_clas_ref(h, params):
    """Pure-JAX reference of the forward pass (eval mode)."""
    w1, b1, w2, b2, w3, b3 = params
    x = jnp.maximum(h @ w1 + b1.reshape(1, -1), 0.0)
    x = jnp.maximum(x @ w2 + b2.reshape(1, -1), 0.0)
    return x @ w3 + b3.reshape(1, -1)


if __name__ == "__main__":
    key = jax.random.PRNGKey(0)
    in_dim, class_dim = 64, 8
    N = 256                          # number of nodes (rows)

    kp, kh = jax.random.split(key)
    params = init_params(kp, in_dim, class_dim)
    h = jax.random.normal(kh, (N, in_dim), jnp.float32)
    ref = node_clas_ref(h, params)

    # default f32 path (exact vs reference up to f32 rounding)
    out = jax.block_until_ready(node_clas_layer(h, params))
    assert out.shape == (N, class_dim)
    assert jnp.allclose(out, ref, atol=1e-4, rtol=1e-4), "mismatch vs reference"

    # unaligned N exercises the row-padding path
    h2 = jax.random.normal(kh, (N + 5, in_dim), jnp.float32)
    out2 = jax.block_until_ready(node_clas_layer(h2, params))
    assert jnp.allclose(out2, node_clas_ref(h2, params), atol=1e-4, rtol=1e-4)

    # bf16 MXU / halved-HBM-read path (f32 accumulation, relaxed tolerance)
    out_bf = jax.block_until_ready(
        node_clas_layer(h, params, compute_dtype=jnp.bfloat16))
    assert out_bf.dtype == h.dtype
    assert jnp.allclose(out_bf, ref, atol=5e-2, rtol=5e-2), "bf16 path mismatch"

    print("KERNEL_OK")
</pallas_src>

<mosaic_0001>
module attributes {stable_mosaic.version = 11 : i64} {
  func.func @node_clas_kernel(%arg0: i32, %arg1: memref<256x64xf32, #tpu.memory_space<vmem>>, %arg2: memref<64x32xf32, #tpu.memory_space<vmem>>, %arg3: memref<1x32xf32, #tpu.memory_space<vmem>>, %arg4: memref<32x16xf32, #tpu.memory_space<vmem>>, %arg5: memref<1x16xf32, #tpu.memory_space<vmem>>, %arg6: memref<16x8xf32, #tpu.memory_space<vmem>>, %arg7: memref<1x8xf32, #tpu.memory_space<vmem>>, %arg8: memref<256x8xf32, #tpu.memory_space<vmem>>) attributes {dimension_semantics = [#tpu.dimension_semantics<parallel>], iteration_bounds = array<i64: 1>, scalar_prefetch = 0 : i64, scratch_operands = 0 : i64, tpu.core_type = #tpu.core_type<tc>, window_params = [{transform_indices = @transform_0, window_bounds = array<i64: 256, 64>}, {pipeline_mode = #tpu.pipeline_mode<synchronous>, transform_indices = @transform_1, window_bounds = array<i64: 64, 32>}, {pipeline_mode = #tpu.pipeline_mode<synchronous>, transform_indices = @transform_2, window_bounds = array<i64: 1, 32>}, {pipeline_mode = #tpu.pipeline_mode<synchronous>, transform_indices = @transform_3, window_bounds = array<i64: 32, 16>}, {pipeline_mode = #tpu.pipeline_mode<synchronous>, transform_indices = @transform_4, window_bounds = array<i64: 1, 16>}, {pipeline_mode = #tpu.pipeline_mode<synchronous>, transform_indices = @transform_5, window_bounds = array<i64: 16, 8>}, {pipeline_mode = #tpu.pipeline_mode<synchronous>, transform_indices = @transform_6, window_bounds = array<i64: 1, 8>}, {transform_indices = @transform_7, window_bounds = array<i64: 256, 8>}]} {
    %c0 = arith.constant 0 : index
    %c0_0 = arith.constant 0 : index
    %0 = vector.load %arg1[%c0, %c0_0] : memref<256x64xf32, #tpu.memory_space<vmem>>, vector<256x64xf32>
    %c0_1 = arith.constant 0 : index
    %c0_2 = arith.constant 0 : index
    %1 = vector.load %arg2[%c0_1, %c0_2] : memref<64x32xf32, #tpu.memory_space<vmem>>, vector<64x32xf32>
    %cst = arith.constant dense<0.000000e+00> : vector<256x32xf32>
    %2 = tpu.matmul %0, %1, %cst {dimension_numbers = #tpu.dot_dimension_numbers<[1], [0], [0], [1], [0, 0, 1, 1], [], []>} : vector<256x64xf32>, vector<64x32xf32>, vector<256x32xf32> -> vector<256x32xf32>
    %c0_3 = arith.constant 0 : index
    %c0_4 = arith.constant 0 : index
    %3 = vector.load %arg3[%c0_3, %c0_4] : memref<1x32xf32, #tpu.memory_space<vmem>>, vector<1x32xf32>
    %4 = vector.broadcast %3 : vector<1x32xf32> to vector<256x32xf32>
    %5 = arith.addf %2, %4 : vector<256x32xf32>
    %cst_5 = arith.constant 0.000000e+00 : f32
    %6 = vector.broadcast %cst_5 : f32 to vector<256x32xf32>
    %7 = arith.maximumf %5, %6 : vector<256x32xf32>
    %c0_6 = arith.constant 0 : index
    %c0_7 = arith.constant 0 : index
    %8 = vector.load %arg4[%c0_6, %c0_7] : memref<32x16xf32, #tpu.memory_space<vmem>>, vector<32x16xf32>
    %cst_8 = arith.constant dense<0.000000e+00> : vector<256x16xf32>
    %9 = tpu.matmul %7, %8, %cst_8 {dimension_numbers = #tpu.dot_dimension_numbers<[1], [0], [0], [1], [0, 0, 1, 1], [], []>} : vector<256x32xf32>, vector<32x16xf32>, vector<256x16xf32> -> vector<256x16xf32>
    %c0_9 = arith.constant 0 : index
    %c0_10 = arith.constant 0 : index
    %10 = vector.load %arg5[%c0_9, %c0_10] : memref<1x16xf32, #tpu.memory_space<vmem>>, vector<1x16xf32>
    %11 = vector.broadcast %10 : vector<1x16xf32> to vector<256x16xf32>
    %12 = arith.addf %9, %11 : vector<256x16xf32>
    %cst_11 = arith.constant 0.000000e+00 : f32
    %13 = vector.broadcast %cst_11 : f32 to vector<256x16xf32>
    %14 = arith.maximumf %12, %13 : vector<256x16xf32>
    %c0_12 = arith.constant 0 : index
    %c0_13 = arith.constant 0 : index
    %15 = vector.load %arg6[%c0_12, %c0_13] : memref<16x8xf32, #tpu.memory_space<vmem>>, vector<16x8xf32>
    %cst_14 = arith.constant dense<0.000000e+00> : vector<256x8xf32>
    %16 = tpu.matmul %14, %15, %cst_14 {dimension_numbers = #tpu.dot_dimension_numbers<[1], [0], [0], [1], [0, 0, 1, 1], [], []>} : vector<256x16xf32>, vector<16x8xf32>, vector<256x8xf32> -> vector<256x8xf32>
    %c0_15 = arith.constant 0 : index
    %c0_16 = arith.constant 0 : index
    %17 = vector.load %arg7[%c0_15, %c0_16] : memref<1x8xf32, #tpu.memory_space<vmem>>, vector<1x8xf32>
    %18 = vector.broadcast %17 : vector<1x8xf32> to vector<256x8xf32>
    %19 = arith.addf %16, %18 : vector<256x8xf32>
    %c0_17 = arith.constant 0 : index
    %c0_18 = arith.constant 0 : index
    %20 = vector.load %arg8[%c0_17, %c0_18] : memref<256x8xf32, #tpu.memory_space<vmem>>, vector<256x8xf32>
    tpu.vector_store %arg8[%c0_17, %c0_18], %19 {strides = array<i32>} : memref<256x8xf32, #tpu.memory_space<vmem>>, vector<256x8xf32>,
    return
  }
  func.func @transform_0(%arg0: i32) -> (i32, i32) {
    %c0_i32 = arith.constant 0 : i32
    %c0_i32_0 = arith.constant 0 : i32
    return %arg0, %c0_i32 : i32, i32
  }
  func.func @transform_1(%arg0: i32) -> (i32, i32) {
    %c0_i32 = arith.constant 0 : i32
    %c0_i32_0 = arith.constant 0 : i32
    %c0_i32_1 = arith.constant 0 : i32
    return %c0_i32, %c0_i32_0 : i32, i32
  }
  func.func @transform_2(%arg0: i32) -> (i32, i32) {
    %c0_i32 = arith.constant 0 : i32
    %c0_i32_0 = arith.constant 0 : i32
    %c0_i32_1 = arith.constant 0 : i32
    return %c0_i32, %c0_i32_0 : i32, i32
  }
  func.func @transform_3(%arg0: i32) -> (i32, i32) {
    %c0_i32 = arith.constant 0 : i32
    %c0_i32_0 = arith.constant 0 : i32
    %c0_i32_1 = arith.constant 0 : i32
    return %c0_i32, %c0_i32_0 : i32, i32
  }
  func.func @transform_4(%arg0: i32) -> (i32, i32) {
    %c0_i32 = arith.constant 0 : i32
    %c0_i32_0 = arith.constant 0 : i32
    %c0_i32_1 = arith.constant 0 : i32
    return %c0_i32, %c0_i32_0 : i32, i32
  }
  func.func @transform_5(%arg0: i32) -> (i32, i32) {
    %c0_i32 = arith.constant 0 : i32
    %c0_i32_0 = arith.constant 0 : i32
    %c0_i32_1 = arith.constant 0 : i32
    return %c0_i32, %c0_i32_0 : i32, i32
  }
  func.func @transform_6(%arg0: i32) -> (i32, i32) {
    %c0_i32 = arith.constant 0 : i32
    %c0_i32_0 = arith.constant 0 : i32
    %c0_i32_1 = arith.constant 0 : i32
    return %c0_i32, %c0_i32_0 : i32, i32
  }
  func.func @transform_7(%arg0: i32) -> (i32, i32) {
    %c0_i32 = arith.constant 0 : i32
    %c0_i32_0 = arith.constant 0 : i32
    return %arg0, %c0_i32 : i32, i32
  }
}

</mosaic_0001>

<bundles_post_ra>
// kernel: tpu_custom_call.1
= control target key start
LH: loop header
LB: loop body
LE: loop exit
PB: predicated region body
PF: predicated region fallthrough
CT: control target
= control target key end

     0   :  { %vm73_vm0 = vcmask 523264   ;;  %vm438_vm1 = vcmask 261120   ;;  %vm801_vm2 = vcmask 130048   ;;  %vm1123_vm3 = vcmask 64512   ;;  %s2066_s1 = inlined_call_operand.vmem [shape: f32[64,32], index: 1, kind: input, shape index: {}]   ;;  %s2067_s0 = inlined_call_operand.vmem [shape: f32[256,64], index: 0, kind: input, shape index: {}]   ;;  %s2068_s3 = inlined_call_operand.vmem [shape: f32[32,16], index: 3, kind: input, shape index: {}]   ;;  %s2069_s5 = inlined_call_operand.vmem [shape: f32[16,8], index: 5, kind: input, shape index: {}]   ;;  %s2070_s2 = inlined_call_operand.vmem [shape: f32[1,32], index: 2, kind: input, shape index: {}]   ;;  %s2071_s4 = inlined_call_operand.vmem [shape: f32[1,16], index: 4, kind: input, shape index: {}]   ;;  %s2072_s6 = inlined_call_operand.vmem [shape: f32[1,8], index: 6, kind: input, shape index: {}]   ;;  %s2073_s7 = inlined_call_operand.vmem [shape: f32[256,8], index: 7, kind: output, shape index: {}]  }
   0x1   :  { %v65_v0 = vld [vmem:[%s2066_s1 + $0x38] sm:$0xff]  ;;  %v64_v1 = vld [vmem:[%s2066_s1 + $0x30] sm:$0xff]  ;;  %v63_v2 = vld [vmem:[%s2066_s1 + $0x28] sm:$0xff] }
   0x2   :  { %1369 = vmatprep.subr.mxu0 %v65_v0  ;;  %v26_v3 = vld [vmem:[%s2067_s0] sm:$0xff]  ;;  %v61_v5 = vld [vmem:[%s2066_s1 + $0x18] sm:$0xff]  ;;  %v60_v6 = vld [vmem:[%s2066_s1 + $0x10] sm:$0xff] }
   0x3   :  { %1370 = vmatpush3.msra.mxu0 %v65_v0  ;;  %1385 = vmatprep.mubr.msk.f32.mxu0 %vm73_vm0, %v26_v3  ;;  %v62_v4 = vld [vmem:[%s2066_s1 + $0x20] sm:$0xff]  ;;  %v59_v7 = vld [vmem:[%s2066_s1 + $0x8] sm:$0xff]  ;;  %v430_v9 = vld [vmem:[%s2068_s3 + $0x18] sm:$0xff] }
   0x4   :  { %1371 = vmatprep.subr.mxu0 %v64_v1  ;;  %v58_v8 = vld [vmem:[%s2066_s1] sm:$0xff]  ;;  %v27_v10 = vld [vmem:[%s2067_s0 + $0x8] sm:$0xff]  ;;  %1541 = vmatprep.subr.mxu1 %v430_v9  ;;  %v28_v11 = vld [vmem:[%s2067_s0 + $0x10] sm:$0xff] }
   0x5   :  { %1372 = vmatpush3.msra.mxu0 %v64_v1  ;;  %v429_v12 = vld [vmem:[%s2068_s3 + $0x10] sm:$0xff]  ;;  %1545 = vmatpush3.msra.mxu1 %v430_v9  ;;  %v29_v13 = vld [vmem:[%s2067_s0 + $0x18] sm:$0xff]  ;;  %v428_v14 = vld [vmem:[%s2068_s3 + $0x8] sm:$0xff] }
   0x6   :  { %1373 = vmatprep.subr.mxu0 %v63_v2  ;;  %1542 = vmatprep.subr.mxu1 %v429_v12  ;;  %v30_v15 = vld [vmem:[%s2067_s0 + $0x20] sm:$0xff]  ;;  %v31_v17 = vld [vmem:[%s2067_s0 + $0x28] sm:$0xff]  ;;  %v32_v18 = vld [vmem:[%s2067_s0 + $0x30] sm:$0xff] }
   0x7   :  { %1374 = vmatpush3.msra.mxu0 %v63_v2  ;;  %1546 = vmatpush3.msra.mxu1 %v429_v12  ;;  %v427_v16 = vld [vmem:[%s2068_s3] sm:$0xff]  ;;  %v33_v19 = vld [vmem:[%s2067_s0 + $0x38] sm:$0xff]  ;;  %v35_v21 = vld [vmem:[%s2067_s0 + $0x48] sm:$0xff] }
   0x8   :  { %1375 = vmatprep.subr.mxu0 %v62_v4  ;;  %1543 = vmatprep.subr.mxu1 %v428_v14  ;;  %v34_v20 = vld [vmem:[%s2067_s0 + $0x40] sm:$0xff]  ;;  %v36_v22 = vld [vmem:[%s2067_s0 + $0x50] sm:$0xff]  ;;  %v37_v23 = vld [vmem:[%s2067_s0 + $0x58] sm:$0xff] }
   0x9   :  { %1376 = vmatpush3.msra.mxu0 %v62_v4  ;;  %1547 = vmatpush3.msra.mxu1 %v428_v14  ;;  %v38_v24 = vld [vmem:[%s2067_s0 + $0x60] sm:$0xff]  ;;  %v39_v25 = vld [vmem:[%s2067_s0 + $0x68] sm:$0xff]  ;;  %v40_v26 = vld [vmem:[%s2067_s0 + $0x70] sm:$0xff] }
   0xa   :  { %1377 = vmatprep.subr.mxu0 %v61_v5  ;;  %1544 = vmatprep.subr.mxu1 %v427_v16  ;;  %v41_v27 = vld [vmem:[%s2067_s0 + $0x78] sm:$0xff]  ;;  %v42_v28 = vld [vmem:[%s2067_s0 + $0x80] sm:$0xff]  ;;  %v43_v29 = vld [vmem:[%s2067_s0 + $0x88] sm:$0xff] }
   0xb   :  { %1378 = vmatpush3.msra.mxu0 %v61_v5  ;;  %1548 = vmatpush3.msra.mxu1 %v427_v16  ;;  %v44_v30 = vld [vmem:[%s2067_s0 + $0x90] sm:$0xff]  ;;  %v45_v31 = vld [vmem:[%s2067_s0 + $0x98] sm:$0xff]  ;;  %v46_v32 = vld [vmem:[%s2067_s0 + $0xa0] sm:$0xff] }
   0xc   :  { %1379 = vmatprep.subr.mxu0 %v60_v6  ;;  %v47_v33 = vld [vmem:[%s2067_s0 + $0xa8] sm:$0xff]  ;;  %v48_v34 = vld [vmem:[%s2067_s0 + $0xb0] sm:$0xff]  ;;  %v49_v35 = vld [vmem:[%s2067_s0 + $0xb8] sm:$0xff] }
   0xd   :  { %1380 = vmatpush3.msra.mxu0 %v60_v6  ;;  %v50_v36 = vld [vmem:[%s2067_s0 + $0xc0] sm:$0xff]  ;;  %v51_v37 = vld [vmem:[%s2067_s0 + $0xc8] sm:$0xff]  ;;  %v52_v38 = vld [vmem:[%s2067_s0 + $0xd0] sm:$0xff] }
   0xe   :  { %1381 = vmatprep.subr.mxu0 %v59_v7  ;;  %v53_v39 = vld [vmem:[%s2067_s0 + $0xd8] sm:$0xff]  ;;  %v54_v40 = vld [vmem:[%s2067_s0 + $0xe0] sm:$0xff]  ;;  %v55_v41 = vld [vmem:[%s2067_s0 + $0xe8] sm:$0xff] }
   0xf   :  { %1382 = vmatpush3.msra.mxu0 %v59_v7  ;;  %v56_v42 = vld [vmem:[%s2067_s0 + $0xf0] sm:$0xff]  ;;  %v57_v43 = vld [vmem:[%s2067_s0 + $0xf8] sm:$0xff]  ;;  %v1756_v44 = vld [vmem:[%s2069_s5 + $0x8] sm:$0xff] }
  0x10   :  { %1383 = vmatprep.subr.mxu0 %v58_v8  ;;  %1489 = vmatprep.subr.mxu1 %v1756_v44  ;;  %v1762_v45 = vld [vmem:[%s2070_s2] ss:$0 sm:$0xff] }
  0x11   :  { %1384 = vmatpush3.msra.mxu0 %v58_v8 }
  0x12   :  { %1386 = vmatmul.mubr.msk.f32.vlgmr.msra.gmra.mxu0 %vm73_vm0, %v27_v10  ;;  %1433 = vmatprep.subr.mxu0 %v430_v9 }
  0x13   :  { %1388 = vmatprep.mubr.msk.f32.mxu0 %vm73_vm0, %v28_v11  ;;  %1434 = vmatpush3.msra.mxu0 %v430_v9 }
  0x14   :  { %1435 = vmatprep.subr.mxu0 %v429_v12 }
  0x15   :  { %1436 = vmatpush3.msra.mxu0 %v429_v12 }
  0x16   :  { %1389 = vmatmul.mubr.msk.f32.gmra.mxu0 %vm73_vm0, %v29_v13  ;;  %1437 = vmatprep.subr.mxu0 %v428_v14 }
  0x17   :  { %1391 = vmatprep.mubr.msk.f32.mxu0 %vm73_vm0, %v30_v15  ;;  %1438 = vmatpush3.msra.mxu0 %v428_v14 }
  0x18   :  { %1439 = vmatprep.subr.mxu0 %v427_v16 }
  0x19   :  { %1440 = vmatpush3.msra.mxu0 %v427_v16 }
  0x1a   :  { %1392 = vmatmul.mubr.msk.f32.gmra.mxu0 %vm73_vm0, %v31_v17 }
  0x1b   :  { %1394 = vmatprep.mubr.msk.f32.mxu0 %vm73_vm0, %v32_v18 }
  0x1e   :  { %1395 = vmatmul.mubr.msk.f32.gmra.mxu0 %vm73_vm0, %v33_v19 }
  0x1f   :  { %1397 = vmatprep.mubr.msk.f32.mxu0 %vm73_vm0, %v34_v20 }
  0x22   :  { %1398 = vmatmul.mubr.msk.f32.gmra.mxu0 %vm73_vm0, %v35_v21 }
  0x23   :  { %1400 = vmatprep.mubr.msk.f32.mxu0 %vm73_vm0, %v36_v22 }
  0x26   :  { %1401 = vmatmul.mubr.msk.f32.gmra.mxu0 %vm73_vm0, %v37_v23 }
  0x27   :  { %1403 = vmatprep.mubr.msk.f32.mxu0 %vm73_vm0, %v38_v24 }
  0x2a   :  { %1404 = vmatmul.mubr.msk.f32.gmra.mxu0 %vm73_vm0, %v39_v25 }
  0x2b   :  { %1406 = vmatprep.mubr.msk.f32.mxu0 %vm73_vm0, %v40_v26 }
  0x2e   :  { %1407 = vmatmul.mubr.msk.f32.gmra.mxu0 %vm73_vm0, %v41_v27 }
  0x2f   :  { %1409 = vmatprep.mubr.msk.f32.mxu0 %vm73_vm0, %v42_v28 }
  0x32   :  { %1410 = vmatmul.mubr.msk.f32.gmra.mxu0 %vm73_vm0, %v43_v29 }
  0x33   :  { %1412 = vmatprep.mubr.msk.f32.mxu0 %vm73_vm0, %v44_v30 }
  0x36   :  { %1413 = vmatmul.mubr.msk.f32.gmra.mxu0 %vm73_vm0, %v45_v31 }
  0x37   :  { %1415 = vmatprep.mubr.msk.f32.mxu0 %vm73_vm0, %v46_v32 }
  0x3a   :  { %1416 = vmatmul.mubr.msk.f32.gmra.mxu0 %vm73_vm0, %v47_v33 }
  0x3b   :  { %1418 = vmatprep.mubr.msk.f32.mxu0 %vm73_vm0, %v48_v34  ;;  %v792_v34 = vld [vmem:[%s2069_s5] sm:$0xff] }
  0x3e   :  { %1419 = vmatmul.mubr.msk.f32.gmra.mxu0 %vm73_vm0, %v49_v35 }
  0x3f   :  { %1421 = vmatprep.mubr.msk.f32.mxu0 %vm73_vm0, %v50_v36 }
  0x42   :  { %1422 = vmatmul.mubr.msk.f32.gmra.mxu0 %vm73_vm0, %v51_v37 }
  0x43   :  { %1424 = vmatprep.mubr.msk.f32.mxu0 %vm73_vm0, %v52_v38 }
  0x46   :  { %1425 = vmatmul.mubr.msk.f32.gmra.mxu0 %vm73_vm0, %v53_v39 }
  0x47   :  { %1427 = vmatprep.mubr.msk.f32.mxu0 %vm73_vm0, %v54_v40 }
  0x4a   :  { %1428 = vmatmul.mubr.msk.f32.gmra.mxu0 %vm73_vm0, %v55_v41 }
  0x4b   :  { %1430 = vmatprep.mubr.msk.f32.mxu0 %vm73_vm0, %v56_v42 }
  0x4e   :  { %1431 = vmatmul.mubr.msk.f32.gmra.mxu0 %vm73_vm0, %v57_v43 }
  0xd2   :  { %v1387_v46 = vpop.f32.mrf.mxu0 }
  0xd3   :  { %v242_v47 = vadd.f32 %v1387_v46, %v1762_v45 }
  0xd4   :  { %v236_v48 = vpop.f32.mrf.mxu0 }
  0xd5   :  { %v237_v49 = vadd.f32 %v1762_v45, %v236_v48  ;;  %v396_v52 = vmax.f32 %v242_v47, 0.0 }
  0xd6   :  { %v1390_v50 = vpop.f32.mrf.mxu0 }
  0xd7   :  { %v395_v51 = vmax.f32 %v237_v49, 0.0  ;;  %v252_v53 = vadd.f32 %v1390_v50, %v1762_v45 }
  0xd8   :  { %v246_v54 = vpop.f32.mrf.mxu0 }
  0xd9   :  { %v247_v55 = vadd.f32 %v1762_v45, %v246_v54  ;;  %1441 = vmatprep.mubr.msk.f32.mxu0 %vm438_vm1, %v395_v51  ;;  %v398_v58 = vmax.f32 %v252_v53, 0.0 }
  0xda   :  { %v1393_v56 = vpop.f32.mrf.mxu0  ;;  %1442 = vmatmul.mubr.msk.f32.vlgmr.msra.gmra.mxu0 %vm438_vm1, %v396_v52 }
  0xdb   :  { %v397_v57 = vmax.f32 %v247_v55, 0.0  ;;  %v262_v59 = vadd.f32 %v1393_v56, %v1762_v45 }
  0xdc   :  { %v256_v60 = vpop.f32.mrf.mxu0 }
  0xdd   :  { %v257_v61 = vadd.f32 %v1762_v45, %v256_v60  ;;  %1444 = vmatprep.mubr.msk.f32.mxu0 %vm438_vm1, %v397_v57  ;;  %v400_v0 = vmax.f32 %v262_v59, 0.0 }
  0xde   :  { %v1396_v62 = vpop.f32.mrf.mxu0  ;;  %1445 = vmatmul.mubr.msk.f32.gmra.mxu0 %vm438_vm1, %v398_v58 }
  0xdf   :  { %v399_v63 = vmax.f32 %v257_v61, 0.0  ;;  %v272_v1 = vadd.f32 %v1396_v62, %v1762_v45 }
  0xe0   :  { %v266_v2 = vpop.f32.mrf.mxu0 }
  0xe1   :  { %v267_v3 = vadd.f32 %v1762_v45, %v266_v2  ;;  %1447 = vmatprep.mubr.msk.f32.mxu0 %vm438_vm1, %v399_v63  ;;  %v402_v6 = vmax.f32 %v272_v1, 0.0 }
  0xe2   :  { %v1399_v4 = vpop.f32.mrf.mxu0  ;;  %1448 = vmatmul.mubr.msk.f32.gmra.mxu0 %vm438_vm1, %v400_v0 }
  0xe3   :  { %v401_v5 = vmax.f32 %v267_v3, 0.0  ;;  %v282_v7 = vadd.f32 %v1399_v4, %v1762_v45 }
  0xe4   :  { %v276_v8 = vpop.f32.mrf.mxu0 }
  0xe5   :  { %v277_v9 = vadd.f32 %v1762_v45, %v276_v8  ;;  %1450 = vmatprep.mubr.msk.f32.mxu0 %vm438_vm1, %v401_v5  ;;  %v404_v12 = vmax.f32 %v282_v7, 0.0 }
  0xe6   :  { %v1402_v10 = vpop.f32.mrf.mxu0  ;;  %1451 = vmatmul.mubr.msk.f32.gmra.mxu0 %vm438_vm1, %v402_v6 }
  0xe7   :  { %v403_v11 = vmax.f32 %v277_v9, 0.0  ;;  %v292_v13 = vadd.f32 %v1402_v10, %v1762_v45 }
  0xe8   :  { %v286_v14 = vpop.f32.mrf.mxu0 }
  0xe9   :  { %v287_v15 = vadd.f32 %v1762_v45, %v286_v14  ;;  %1453 = vmatprep.mubr.msk.f32.mxu0 %vm438_vm1, %v403_v11  ;;  %v406_v18 = vmax.f32 %v292_v13, 0.0 }
  0xea   :  { %v1405_v16 = vpop.f32.mrf.mxu0  ;;  %1454 = vmatmul.mubr.msk.f32.gmra.mxu0 %vm438_vm1, %v404_v12 }
  0xeb   :  { %v405_v17 = vmax.f32 %v287_v15, 0.0  ;;  %v302_v19 = vadd.f32 %v1405_v16, %v1762_v45  ;;  %v1835_v16 = vld [vmem:[%s2071_s4] ss:$0 sm:$0xff] }
  0xec   :  { %v296_v20 = vpop.f32.mrf.mxu0 }
  0xed   :  { %v297_v21 = vadd.f32 %v1762_v45, %v296_v20  ;;  %1456 = vmatprep.mubr.msk.f32.mxu0 %vm438_vm1, %v405_v17  ;;  %v408_v24 = vmax.f32 %v302_v19, 0.0 }
  0xee   :  { %v1408_v22 = vpop.f32.mrf.mxu0  ;;  %1457 = vmatmul.mubr.msk.f32.gmra.mxu0 %vm438_vm1, %v406_v18 }
  0xef   :  { %v407_v23 = vmax.f32 %v297_v21, 0.0  ;;  %v312_v25 = vadd.f32 %v1408_v22, %v1762_v45 }
  0xf0   :  { %v306_v26 = vpop.f32.mrf.mxu0 }
  0xf1   :  { %v307_v27 = vadd.f32 %v1762_v45, %v306_v26  ;;  %1459 = vmatprep.mubr.msk.f32.mxu0 %vm438_vm1, %v407_v23  ;;  %v410_v30 = vmax.f32 %v312_v25, 0.0 }
  0xf2   :  { %v1411_v28 = vpop.f32.mrf.mxu0  ;;  %1460 = vmatmul.mubr.msk.f32.gmra.mxu0 %vm438_vm1, %v408_v24 }
  0xf3   :  { %v409_v29 = vmax.f32 %v307_v27, 0.0  ;;  %v322_v31 = vadd.f32 %v1411_v28, %v1762_v45 }
  0xf4   :  { %v316_v32 = vpop.f32.mrf.mxu0 }
  0xf5   :  { %v317_v33 = vadd.f32 %v1762_v45, %v316_v32  ;;  %1462 = vmatprep.mubr.msk.f32.mxu1 %vm438_vm1, %v409_v29  ;;  %v412_v37 = vmax.f32 %v322_v31, 0.0 }
  0xf6   :  { %v1414_v35 = vpop.f32.mrf.mxu0  ;;  %1463 = vmatmul.mubr.msk.f32.vlgmr.msra.gmra.mxu1 %vm438_vm1, %v410_v30 }
  0xf7   :  { %v411_v36 = vmax.f32 %v317_v33, 0.0  ;;  %1490 = vmatpush3.msra.mxu1 %v1756_v44  ;;  %v332_v38 = vadd.f32 %v1414_v35, %v1762_v45 }
  0xf8   :  { %v326_v39 = vpop.f32.mrf.mxu0  ;;  %1491 = vmatprep.subr.mxu1 %v792_v34 }
  0xf9   :  { %v327_v40 = vadd.f32 %v1762_v45, %v326_v39  ;;  %1465 = vmatprep.mubr.msk.f32.mxu1 %vm438_vm1, %v411_v36  ;;  %1492 = vmatpush3.msra.mxu1 %v792_v34  ;;  %v414_v43 = vmax.f32 %v332_v38, 0.0 }
  0xfa   :  { %v1417_v41 = vpop.f32.mrf.mxu0  ;;  %1466 = vmatmul.mubr.msk.f32.gmra.mxu1 %vm438_vm1, %v412_v37 }
  0xfb   :  { %v413_v42 = vmax.f32 %v327_v40, 0.0  ;;  %v342_v46 = vadd.f32 %v1417_v41, %v1762_v45 }
  0xfc   :  { %v336_v47 = vpop.f32.mrf.mxu0 }
  0xfd   :  { %v337_v44 = vadd.f32 %v1762_v45, %v336_v47  ;;  %1468 = vmatprep.mubr.msk.f32.mxu1 %vm438_vm1, %v413_v42  ;;  %v416_v50 = vmax.f32 %v342_v46, 0.0 }
  0xfe   :  { %v1420_v48 = vpop.f32.mrf.mxu0  ;;  %1469 = vmatmul.mubr.msk.f32.gmra.mxu1 %vm438_vm1, %v414_v43 }
  0xff   :  { %v415_v49 = vmax.f32 %v337_v44, 0.0  ;;  %v352_v51 = vadd.f32 %v1420_v48, %v1762_v45 }
 0x100   :  { %v346_v52 = vpop.f32.mrf.mxu0 }
 0x101   :  { %v347_v53 = vadd.f32 %v1762_v45, %v346_v52  ;;  %1471 = vmatprep.mubr.msk.f32.mxu1 %vm438_vm1, %v415_v49  ;;  %v418_v56 = vmax.f32 %v352_v51, 0.0 }
 0x102   :  { %v1423_v54 = vpop.f32.mrf.mxu0  ;;  %1472 = vmatmul.mubr.msk.f32.gmra.mxu1 %vm438_vm1, %v416_v50 }
 0x103   :  { %v417_v55 = vmax.f32 %v347_v53, 0.0  ;;  %v362_v57 = vadd.f32 %v1423_v54, %v1762_v45 }
 0x104   :  { %v356_v58 = vpop.f32.mrf.mxu0 }
 0x105   :  { %v357_v59 = vadd.f32 %v1762_v45, %v356_v58  ;;  %1474 = vmatprep.mubr.msk.f32.mxu1 %vm438_vm1, %v417_v55  ;;  %v420_v62 = vmax.f32 %v362_v57, 0.0 }
 0x106   :  { %v1426_v60 = vpop.f32.mrf.mxu0  ;;  %1475 = vmatmul.mubr.msk.f32.gmra.mxu1 %vm438_vm1, %v418_v56 }
 0x107   :  { %v419_v61 = vmax.f32 %v357_v59, 0.0  ;;  %v372_v63 = vadd.f32 %v1426_v60, %v1762_v45 }
 0x108   :  { %v366_v0 = vpop.f32.mrf.mxu0 }
 0x109   :  { %v367_v1 = vadd.f32 %v1762_v45, %v366_v0  ;;  %1477 = vmatprep.mubr.msk.f32.mxu1 %vm438_vm1, %v419_v61  ;;  %v422_v4 = vmax.f32 %v372_v63, 0.0 }
 0x10a   :  { %v1429_v2 = vpop.f32.mrf.mxu0  ;;  %1478 = vmatmul.mubr.msk.f32.gmra.mxu1 %vm438_vm1, %v420_v62 }
 0x10b   :  { %v421_v3 = vmax.f32 %v367_v1, 0.0  ;;  %v382_v5 = vadd.f32 %v1429_v2, %v1762_v45 }
 0x10c   :  { %v376_v6 = vpop.f32.mrf.mxu0 }
 0x10d   :  { %v377_v7 = vadd.f32 %v1762_v45, %v376_v6  ;;  %1480 = vmatprep.mubr.msk.f32.mxu1 %vm438_vm1, %v421_v3  ;;  %v424_v10 = vmax.f32 %v382_v5, 0.0 }
 0x10e   :  { %v1432_v8 = vpop.f32.mrf.mxu0  ;;  %1481 = vmatmul.mubr.msk.f32.gmra.mxu1 %vm438_vm1, %v422_v4 }
 0x10f   :  { %v423_v9 = vmax.f32 %v377_v7, 0.0  ;;  %v392_v11 = vadd.f32 %v1432_v8, %v1762_v45 }
 0x110   :  { %v386_v12 = vpop.f32.mrf.mxu0 }
 0x111   :  { %v387_v13 = vadd.f32 %v1762_v45, %v386_v12  ;;  %1483 = vmatprep.mubr.msk.f32.mxu1 %vm438_vm1, %v423_v9  ;;  %v426_v15 = vmax.f32 %v392_v11, 0.0 }
 0x112   :  { %1484 = vmatmul.mubr.msk.f32.gmra.mxu1 %vm438_vm1, %v424_v10 }
 0x113   :  { %v425_v14 = vmax.f32 %v387_v13, 0.0 }
 0x115   :  { %1486 = vmatprep.mubr.msk.f32.mxu1 %vm438_vm1, %v425_v14 }
 0x116   :  { %1487 = vmatmul.mubr.msk.f32.gmra.mxu1 %vm438_vm1, %v426_v15 }
 0x19a   :  { %v1443_v17 = vpop.f32.mrf.mxu0 }
 0x19b   :  { %v607_v18 = vadd.f32 %v1443_v17, %v1835_v16 }
 0x19c   :  { %v601_v19 = vpop.f32.mrf.mxu0 }
 0x19d   :  { %v602_v45 = vadd.f32 %v1835_v16, %v601_v19  ;;  %v761_v22 = vmax.f32 %v607_v18, 0.0 }
 0x19e   :  { %v1446_v20 = vpop.f32.mrf.mxu0 }
 0x19f   :  { %v760_v21 = vmax.f32 %v602_v45, 0.0  ;;  %v617_v23 = vadd.f32 %v1446_v20, %v1835_v16 }
 0x1a0   :  { %v611_v24 = vpop.f32.mrf.mxu0 }
 0x1a1   :  { %v612_v25 = vadd.f32 %v1835_v16, %v611_v24  ;;  %1493 = vmatprep.mubr.msk.f32.mxu1 %vm801_vm2, %v760_v21  ;;  %v763_v28 = vmax.f32 %v617_v23, 0.0 }
 0x1a2   :  { %v1449_v26 = vpop.f32.mrf.mxu0  ;;  %1494 = vmatmul.mubr.msk.f32.vlgmr.msra.gmra.mxu1 %vm801_vm2, %v761_v22 }
 0x1a3   :  { %v762_v27 = vmax.f32 %v612_v25, 0.0  ;;  %v627_v29 = vadd.f32 %v1449_v26, %v1835_v16 }
 0x1a4   :  { %v621_v30 = vpop.f32.mrf.mxu0 }
 0x1a5   :  { %v622_v31 = vadd.f32 %v1835_v16, %v621_v30  ;;  %1496 = vmatprep.mubr.msk.f32.mxu1 %vm801_vm2, %v762_v27  ;;  %v765_v34 = vmax.f32 %v627_v29, 0.0 }
 0x1a6   :  { %v1452_v32 = vpop.f32.mrf.mxu0  ;;  %1497 = vmatmul.mubr.msk.f32.gmra.mxu1 %vm801_vm2, %v763_v28 }
 0x1a7   :  { %v764_v33 = vmax.f32 %v622_v31, 0.0  ;;  %v637_v35 = vadd.f32 %v1452_v32, %v1835_v16 }
 0x1a8   :  { %v631_v36 = vpop.f32.mrf.mxu0 }
 0x1a9   :  { %v632_v37 = vadd.f32 %v1835_v16, %v631_v36  ;;  %1499 = vmatprep.mubr.msk.f32.mxu1 %vm801_vm2, %v764_v33  ;;  %v767_v40 = vmax.f32 %v637_v35, 0.0 }
 0x1aa   :  { %v1455_v38 = vpop.f32.mrf.mxu0  ;;  %1500 = vmatmul.mubr.msk.f32.gmra.mxu1 %vm801_vm2, %v765_v34 }
 0x1ab   :  { %v766_v39 = vmax.f32 %v632_v37, 0.0  ;;  %v647_v41 = vadd.f32 %v1455_v38, %v1835_v16 }
 0x1ac   :  { %v641_v42 = vpop.f32.mrf.mxu0 }
 0x1ad   :  { %v642_v43 = vadd.f32 %v1835_v16, %v641_v42  ;;  %1502 = vmatprep.mubr.msk.f32.mxu1 %vm801_vm2, %v766_v39  ;;  %v769_v44 = vmax.f32 %v647_v41, 0.0 }
 0x1ae   :  { %v1458_v46 = vpop.f32.mrf.mxu0  ;;  %1503 = vmatmul.mubr.msk.f32.gmra.mxu1 %vm801_vm2, %v767_v40 }
 0x1af   :  { %v768_v47 = vmax.f32 %v642_v43, 0.0  ;;  %v657_v48 = vadd.f32 %v1458_v46, %v1835_v16 }
 0x1b0   :  { %v651_v49 = vpop.f32.mrf.mxu0 }
 0x1b1   :  { %v652_v50 = vadd.f32 %v1835_v16, %v651_v49  ;;  %1505 = vmatprep.mubr.msk.f32.mxu1 %vm801_vm2, %v768_v47  ;;  %v771_v53 = vmax.f32 %v657_v48, 0.0 }
 0x1b2   :  { %v1461_v51 = vpop.f32.mrf.mxu0  ;;  %1506 = vmatmul.mubr.msk.f32.gmra.mxu1 %vm801_vm2, %v769_v44 }
 0x1b3   :  { %v770_v52 = vmax.f32 %v652_v50, 0.0  ;;  %v667_v54 = vadd.f32 %v1461_v51, %v1835_v16  ;;  %v1904_v50 = vld [vmem:[%s2072_s6] ss:$0 sm:$0xff] }
 0x1b4   :  { %v661_v55 = vpop.f32.mrf.mxu0 }
 0x1b5   :  { %v662_v56 = vadd.f32 %v1835_v16, %v661_v55  ;;  %1508 = vmatprep.mubr.msk.f32.mxu1 %vm801_vm2, %v770_v52  ;;  %v773_v59 = vmax.f32 %v667_v54, 0.0 }
 0x1b6   :  { %v1464_v57 = vpop.f32.mrf.mxu1  ;;  %1509 = vmatmul.mubr.msk.f32.gmra.mxu1 %vm801_vm2, %v771_v53 }
 0x1b7   :  { %v772_v58 = vmax.f32 %v662_v56, 0.0  ;;  %v677_v60 = vadd.f32 %v1464_v57, %v1835_v16 }
 0x1b8   :  { %v671_v61 = vpop.f32.mrf.mxu1 }
 0x1b9   :  { %v672_v62 = vadd.f32 %v1835_v16, %v671_v61  ;;  %1511 = vmatprep.mubr.msk.f32.mxu1 %vm801_vm2, %v772_v58  ;;  %v775_v1 = vmax.f32 %v677_v60, 0.0 }
 0x1ba   :  { %v1467_v63 = vpop.f32.mrf.mxu1  ;;  %1512 = vmatmul.mubr.msk.f32.gmra.mxu1 %vm801_vm2, %v773_v59 }
 0x1bb   :  { %v774_v0 = vmax.f32 %v672_v62, 0.0  ;;  %v687_v2 = vadd.f32 %v1467_v63, %v1835_v16 }
 0x1bc   :  { %v681_v3 = vpop.f32.mrf.mxu1 }
 0x1bd   :  { %v682_v4 = vadd.f32 %v1835_v16, %v681_v3  ;;  %1514 = vmatprep.mubr.msk.f32.mxu1 %vm801_vm2, %v774_v0  ;;  %v777_v7 = vmax.f32 %v687_v2, 0.0 }
 0x1be   :  { %v1470_v5 = vpop.f32.mrf.mxu1  ;;  %1515 = vmatmul.mubr.msk.f32.gmra.mxu1 %vm801_vm2, %v775_v1 }
 0x1bf   :  { %v776_v6 = vmax.f32 %v682_v4, 0.0  ;;  %v697_v8 = vadd.f32 %v1470_v5, %v1835_v16 }
 0x1c0   :  { %v691_v9 = vpop.f32.mrf.mxu1 }
 0x1c1   :  { %v692_v10 = vadd.f32 %v1835_v16, %v691_v9  ;;  %1517 = vmatprep.mubr.msk.f32.mxu1 %vm801_vm2, %v776_v6  ;;  %v779_v13 = vmax.f32 %v697_v8, 0.0 }
 0x1c2   :  { %v1473_v11 = vpop.f32.mrf.mxu1  ;;  %1518 = vmatmul.mubr.msk.f32.gmra.mxu1 %vm801_vm2, %v777_v7 }
 0x1c3   :  { %v778_v12 = vmax.f32 %v692_v10, 0.0  ;;  %v707_v14 = vadd.f32 %v1473_v11, %v1835_v16 }
 0x1c4   :  { %v701_v15 = vpop.f32.mrf.mxu1 }
 0x1c5   :  { %v702_v17 = vadd.f32 %v1835_v16, %v701_v15  ;;  %1520 = vmatprep.mubr.msk.f32.mxu1 %vm801_vm2, %v778_v12  ;;  %v781_v45 = vmax.f32 %v707_v14, 0.0 }
 0x1c6   :  { %v1476_v18 = vpop.f32.mrf.mxu1  ;;  %1521 = vmatmul.mubr.msk.f32.gmra.mxu1 %vm801_vm2, %v779_v13 }
 0x1c7   :  { %v780_v19 = vmax.f32 %v702_v17, 0.0  ;;  %v717_v20 = vadd.f32 %v1476_v18, %v1835_v16 }
 0x1c8   :  { %v711_v21 = vpop.f32.mrf.mxu1 }
 0x1c9   :  { %v712_v22 = vadd.f32 %v1835_v16, %v711_v21  ;;  %1523 = vmatprep.mubr.msk.f32.mxu1 %vm801_vm2, %v780_v19  ;;  %v783_v25 = vmax.f32 %v717_v20, 0.0 }
 0x1ca   :  { %v1479_v23 = vpop.f32.mrf.mxu1  ;;  %1524 = vmatmul.mubr.msk.f32.gmra.mxu1 %vm801_vm2, %v781_v45 }
 0x1cb   :  { %v782_v24 = vmax.f32 %v712_v22, 0.0  ;;  %v727_v26 = vadd.f32 %v1479_v23, %v1835_v16 }
 0x1cc   :  { %v721_v27 = vpop.f32.mrf.mxu1 }
 0x1cd   :  { %v722_v28 = vadd.f32 %v1835_v16, %v721_v27  ;;  %1526 = vmatprep.mubr.msk.f32.mxu1 %vm801_vm2, %v782_v24  ;;  %v785_v31 = vmax.f32 %v727_v26, 0.0 }
 0x1ce   :  { %v1482_v29 = vpop.f32.mrf.mxu1  ;;  %1527 = vmatmul.mubr.msk.f32.gmra.mxu1 %vm801_vm2, %v783_v25 }
 0x1cf   :  { %v784_v30 = vmax.f32 %v722_v28, 0.0  ;;  %v737_v32 = vadd.f32 %v1482_v29, %v1835_v16 }
 0x1d0   :  { %v731_v33 = vpop.f32.mrf.mxu1 }
 0x1d1   :  { %v732_v34 = vadd.f32 %v1835_v16, %v731_v33  ;;  %1529 = vmatprep.mubr.msk.f32.mxu1 %vm801_vm2, %v784_v30  ;;  %v787_v37 = vmax.f32 %v737_v32, 0.0 }
 0x1d2   :  { %v1485_v35 = vpop.f32.mrf.mxu1  ;;  %1530 = vmatmul.mubr.msk.f32.gmra.mxu1 %vm801_vm2, %v785_v31 }
 0x1d3   :  { %v786_v36 = vmax.f32 %v732_v34, 0.0  ;;  %v747_v38 = vadd.f32 %v1485_v35, %v1835_v16 }
 0x1d4   :  { %v741_v39 = vpop.f32.mrf.mxu1 }
 0x1d5   :  { %v742_v40 = vadd.f32 %v1835_v16, %v741_v39  ;;  %1532 = vmatprep.mubr.msk.f32.mxu1 %vm801_vm2, %v786_v36  ;;  %v789_v43 = vmax.f32 %v747_v38, 0.0 }
 0x1d6   :  { %v1488_v41 = vpop.f32.mrf.mxu1  ;;  %1533 = vmatmul.mubr.msk.f32.gmra.mxu1 %vm801_vm2, %v787_v37 }
 0x1d7   :  { %v788_v42 = vmax.f32 %v742_v40, 0.0  ;;  %v757_v46 = vadd.f32 %v1488_v41, %v1835_v16 }
 0x1d8   :  { %v751_v47 = vpop.f32.mrf.mxu1 }
 0x1d9   :  { %v752_v44 = vadd.f32 %v1835_v16, %v751_v47  ;;  %1535 = vmatprep.mubr.msk.f32.mxu1 %vm801_vm2, %v788_v42  ;;  %v791_v49 = vmax.f32 %v757_v46, 0.0 }
 0x1da   :  { %1536 = vmatmul.mubr.msk.f32.gmra.mxu1 %vm801_vm2, %v789_v43 }
 0x1db   :  { %v790_v48 = vmax.f32 %v752_v44, 0.0 }
 0x1dd   :  { %1538 = vmatprep.mubr.msk.f32.mxu1 %vm801_vm2, %v790_v48 }
 0x1de   :  { %1539 = vmatmul.mubr.msk.f32.gmra.mxu1 %vm801_vm2, %v791_v49 }
 0x262   :  { %v1495_v51 = vpop.f32.mrf.mxu1 }
 0x263   :  { %v970_v52 = vadd.f32 %v1495_v51, %v1904_v50 }
 0x264   :  { %v964_v16 = vpop.f32.mrf.mxu1 }
 0x265   :  { %1125 = vst.msk [vmem:[%s2073_s7 + $0x8] sm:$0xff] %vm1123_vm3, %v970_v52  ;;  %v965_v53 = vadd.f32 %v1904_v50, %v964_v16 }
 0x266   :  { %v1498_v54 = vpop.f32.mrf.mxu1 }
 0x267   :  { %1124 = vst.msk [vmem:[%s2073_s7] sm:$0xff] %vm1123_vm3, %v965_v53  ;;  %v980_v55 = vadd.f32 %v1498_v54, %v1904_v50 }
 0x268   :  { %v974_v56 = vpop.f32.mrf.mxu1 }
 0x269   :  { %1127 = vst.msk [vmem:[%s2073_s7 + $0x18] sm:$0xff] %vm1123_vm3, %v980_v55  ;;  %v975_v57 = vadd.f32 %v1904_v50, %v974_v56 }
 0x26a   :  { %v1501_v58 = vpop.f32.mrf.mxu1 }
 0x26b   :  { %1126 = vst.msk [vmem:[%s2073_s7 + $0x10] sm:$0xff] %vm1123_vm3, %v975_v57  ;;  %v990_v59 = vadd.f32 %v1501_v58, %v1904_v50 }
 0x26c   :  { %v984_v60 = vpop.f32.mrf.mxu1 }
 0x26d   :  { %1129 = vst.msk [vmem:[%s2073_s7 + $0x28] sm:$0xff] %vm1123_vm3, %v990_v59  ;;  %v985_v61 = vadd.f32 %v1904_v50, %v984_v60 }
 0x26e   :  { %v1504_v62 = vpop.f32.mrf.mxu1 }
 0x26f   :  { %1128 = vst.msk [vmem:[%s2073_s7 + $0x20] sm:$0xff] %vm1123_vm3, %v985_v61  ;;  %v1000_v63 = vadd.f32 %v1504_v62, %v1904_v50 }
 0x270   :  { %v994_v0 = vpop.f32.mrf.mxu1 }
 0x271   :  { %1131 = vst.msk [vmem:[%s2073_s7 + $0x38] sm:$0xff] %vm1123_vm3, %v1000_v63  ;;  %v995_v1 = vadd.f32 %v1904_v50, %v994_v0 }
 0x272   :  { %v1507_v2 = vpop.f32.mrf.mxu1 }
 0x273   :  { %1130 = vst.msk [vmem:[%s2073_s7 + $0x30] sm:$0xff] %vm1123_vm3, %v995_v1  ;;  %v1010_v3 = vadd.f32 %v1507_v2, %v1904_v50 }
 0x274   :  { %v1004_v4 = vpop.f32.mrf.mxu1 }
 0x275   :  { %1133 = vst.msk [vmem:[%s2073_s7 + $0x48] sm:$0xff] %vm1123_vm3, %v1010_v3  ;;  %v1005_v5 = vadd.f32 %v1904_v50, %v1004_v4 }
 0x276   :  { %v1510_v6 = vpop.f32.mrf.mxu1 }
 0x277   :  { %1132 = vst.msk [vmem:[%s2073_s7 + $0x40] sm:$0xff] %vm1123_vm3, %v1005_v5  ;;  %v1020_v7 = vadd.f32 %v1510_v6, %v1904_v50 }
 0x278   :  { %v1014_v8 = vpop.f32.mrf.mxu1 }
 0x279   :  { %1135 = vst.msk [vmem:[%s2073_s7 + $0x58] sm:$0xff] %vm1123_vm3, %v1020_v7  ;;  %v1015_v9 = vadd.f32 %v1904_v50, %v1014_v8 }
 0x27a   :  { %v1513_v10 = vpop.f32.mrf.mxu1 }
 0x27b   :  { %1134 = vst.msk [vmem:[%s2073_s7 + $0x50] sm:$0xff] %vm1123_vm3, %v1015_v9  ;;  %v1030_v11 = vadd.f32 %v1513_v10, %v1904_v50 }
 0x27c   :  { %v1024_v12 = vpop.f32.mrf.mxu1 }
 0x27d   :  { %1137 = vst.msk [vmem:[%s2073_s7 + $0x68] sm:$0xff] %vm1123_vm3, %v1030_v11  ;;  %v1025_v13 = vadd.f32 %v1904_v50, %v1024_v12 }
 0x27e   :  { %v1516_v14 = vpop.f32.mrf.mxu1 }
 0x27f   :  { %1136 = vst.msk [vmem:[%s2073_s7 + $0x60] sm:$0xff] %vm1123_vm3, %v1025_v13  ;;  %v1040_v15 = vadd.f32 %v1516_v14, %v1904_v50 }
 0x280   :  { %v1034_v17 = vpop.f32.mrf.mxu1 }
 0x281   :  { %1139 = vst.msk [vmem:[%s2073_s7 + $0x78] sm:$0xff] %vm1123_vm3, %v1040_v15  ;;  %v1035_v18 = vadd.f32 %v1904_v50, %v1034_v17 }
 0x282   :  { %v1519_v19 = vpop.f32.mrf.mxu1 }
 0x283   :  { %1138 = vst.msk [vmem:[%s2073_s7 + $0x70] sm:$0xff] %vm1123_vm3, %v1035_v18  ;;  %v1050_v45 = vadd.f32 %v1519_v19, %v1904_v50 }
 0x284   :  { %v1044_v20 = vpop.f32.mrf.mxu1 }
 0x285   :  { %1141 = vst.msk [vmem:[%s2073_s7 + $0x88] sm:$0xff] %vm1123_vm3, %v1050_v45  ;;  %v1045_v21 = vadd.f32 %v1904_v50, %v1044_v20 }
 0x286   :  { %v1522_v22 = vpop.f32.mrf.mxu1 }
 0x287   :  { %1140 = vst.msk [vmem:[%s2073_s7 + $0x80] sm:$0xff] %vm1123_vm3, %v1045_v21  ;;  %v1060_v23 = vadd.f32 %v1522_v22, %v1904_v50 }
 0x288   :  { %v1054_v24 = vpop.f32.mrf.mxu1 }
 0x289   :  { %1143 = vst.msk [vmem:[%s2073_s7 + $0x98] sm:$0xff] %vm1123_vm3, %v1060_v23  ;;  %v1055_v25 = vadd.f32 %v1904_v50, %v1054_v24 }
 0x28a   :  { %v1525_v26 = vpop.f32.mrf.mxu1 }
 0x28b   :  { %1142 = vst.msk [vmem:[%s2073_s7 + $0x90] sm:$0xff] %vm1123_vm3, %v1055_v25  ;;  %v1070_v27 = vadd.f32 %v1525_v26, %v1904_v50 }
 0x28c   :  { %v1064_v28 = vpop.f32.mrf.mxu1 }
 0x28d   :  { %1145 = vst.msk [vmem:[%s2073_s7 + $0xa8] sm:$0xff] %vm1123_vm3, %v1070_v27  ;;  %v1065_v29 = vadd.f32 %v1904_v50, %v1064_v28 }
 0x28e   :  { %v1528_v30 = vpop.f32.mrf.mxu1 }
 0x28f   :  { %1144 = vst.msk [vmem:[%s2073_s7 + $0xa0] sm:$0xff] %vm1123_vm3, %v1065_v29  ;;  %v1080_v31 = vadd.f32 %v1528_v30, %v1904_v50 }
 0x290   :  { %v1074_v32 = vpop.f32.mrf.mxu1 }
 0x291   :  { %1147 = vst.msk [vmem:[%s2073_s7 + $0xb8] sm:$0xff] %vm1123_vm3, %v1080_v31  ;;  %v1075_v33 = vadd.f32 %v1904_v50, %v1074_v32 }
 0x292   :  { %v1531_v34 = vpop.f32.mrf.mxu1 }
 0x293   :  { %1146 = vst.msk [vmem:[%s2073_s7 + $0xb0] sm:$0xff] %vm1123_vm3, %v1075_v33  ;;  %v1090_v35 = vadd.f32 %v1531_v34, %v1904_v50 }
 0x294   :  { %v1084_v36 = vpop.f32.mrf.mxu1 }
 0x295   :  { %1149 = vst.msk [vmem:[%s2073_s7 + $0xc8] sm:$0xff] %vm1123_vm3, %v1090_v35  ;;  %v1085_v37 = vadd.f32 %v1904_v50, %v1084_v36 }
 0x296   :  { %v1534_v38 = vpop.f32.mrf.mxu1 }
 0x297   :  { %1148 = vst.msk [vmem:[%s2073_s7 + $0xc0] sm:$0xff] %vm1123_vm3, %v1085_v37  ;;  %v1100_v39 = vadd.f32 %v1534_v38, %v1904_v50 }
 0x298   :  { %v1094_v40 = vpop.f32.mrf.mxu1 }
 0x299   :  { %1151 = vst.msk [vmem:[%s2073_s7 + $0xd8] sm:$0xff] %vm1123_vm3, %v1100_v39  ;;  %v1095_v41 = vadd.f32 %v1904_v50, %v1094_v40 }
 0x29a   :  { %v1537_v42 = vpop.f32.mrf.mxu1 }
 0x29b   :  { %1150 = vst.msk [vmem:[%s2073_s7 + $0xd0] sm:$0xff] %vm1123_vm3, %v1095_v41  ;;  %v1110_v43 = vadd.f32 %v1537_v42, %v1904_v50 }
 0x29c   :  { %v1104_v46 = vpop.f32.mrf.mxu1 }
 0x29d   :  { %1153 = vst.msk [vmem:[%s2073_s7 + $0xe8] sm:$0xff] %vm1123_vm3, %v1110_v43  ;;  %v1105_v47 = vadd.f32 %v1904_v50, %v1104_v46 }
 0x29e   :  { %v1540_v44 = vpop.f32.mrf.mxu1 }
 0x29f   :  { %1152 = vst.msk [vmem:[%s2073_s7 + $0xe0] sm:$0xff] %vm1123_vm3, %v1105_v47  ;;  %v1120_v48 = vadd.f32 %v1540_v44, %v1904_v50 }
 0x2a0   :  { %v1114_v49 = vpop.f32.mrf.mxu1 }
 0x2a1   :  { %1155 = vst.msk [vmem:[%s2073_s7 + $0xf8] sm:$0xff] %vm1123_vm3, %v1120_v48  ;;  %v1115_v51 = vadd.f32 %v1904_v50, %v1114_v49 }
 0x2a3   :  { %1154 = vst.msk [vmem:[%s2073_s7 + $0xf0] sm:$0xff] %vm1123_vm3, %v1115_v51 }

</bundles_post_ra>
